<compile_context>
chip_gen: v6e
topology: v6e:2x2x1
jax: 0.10.0
libtpu: 0.0.40
codegen_flags: <defaults>
</compile_context>

<pallas_src>
import functools

import jax
import jax.numpy as jnp
from jax.experimental import pallas as pl
from jax.experimental.pallas import tpu as pltpu


# ----------------------------------------------------------------------------
# Helpers
# ----------------------------------------------------------------------------
def _round_up(x, m):
    return ((x + m - 1) // m) * m


def _choose_tn(f_pad):
    """Lane tile for the output/RHS feature axis.  Prefer the full padded
    width so the A matrix is streamed exactly once per layer."""
    if f_pad <= 512:
        return f_pad
    for t in (512, 256, 128):
        if f_pad % t == 0:
            return t
    return 128  # unreachable: f_pad is always a multiple of 128


def _vmem_footprint(tm, tk, tn, out_bytes):
    # double-buffered bf16 A + H inputs, f32 accumulator, double-buffered out.
    return (2 * (tm * tk + tk * tn) * 2) + tm * tn * 4 + 2 * tm * tn * out_bytes


def _choose_tiles(n_pad, tn, out_bytes, budget=30 * 1024 * 1024):
    """Largest (tm, tk) divisors of n_pad that keep the pipelined VMEM
    footprint under `budget` (v7x-safe)."""
    tm_cands = [t for t in (1024, 512, 256, 128) if t <= n_pad and n_pad % t == 0]
    if n_pad >= 256:
        # v7x megacore: keep >= 2 row blocks so the parallel axis has work.
        two = [t for t in tm_cands if n_pad // t >= 2]
        if two:
            tm_cands = two
    tk_cands = [t for t in (4096, 2048, 1024, 512, 256, 128)
                if t <= n_pad and n_pad % t == 0]
    best = None
    for tm in tm_cands:
        for tk in tk_cands:
            if _vmem_footprint(tm, tk, tn, out_bytes) > budget:
                continue
            if (best is None or tm * tk > best[0] * best[1]
                    or (tm * tk == best[0] * best[1] and tk > best[1])):
                best = (tm, tk)
    if best is None:
        best = (128, 128)
    return best


# ----------------------------------------------------------------------------
# Block-sparsity metadata (scalar-prefetched into SMEM)
# ----------------------------------------------------------------------------
def build_block_mask(edge_index, num_nodes, n_pad, tm, tk):
    """block_mask[i, k] = 1 iff A_pad block (i, k) may contain non-zeros.
    fetch_idx[i, k]     = last non-zero k-block index at or before k (0 if
                          none yet) -> reusing it elides the DMA for zero
                          blocks."""
    nbi, nbk = n_pad // tm, n_pad // tk
    src = edge_index[0]
    dst = edge_index[1]
    loop = jnp.arange(num_nodes, dtype=edge_index.dtype)
    rows = jnp.concatenate([dst, loop])        # A[dst, src] += norm
    cols = jnp.concatenate([src, loop])
    ones = jnp.ones(rows.shape, jnp.int32)
    mask = jnp.zeros((nbi, nbk), jnp.int32).at[rows // tm, cols // tk].max(ones)

    k_ids = jnp.arange(nbk, dtype=jnp.int32)[None, :]
    fetch = jax.lax.cummax(jnp.where(mask > 0, k_ids, -1), axis=1)
    fetch = jnp.maximum(fetch, 0).astype(jnp.int32)
    return mask, fetch


# ----------------------------------------------------------------------------
# Pallas kernel: tiled  out = act(A @ H + b)  with zero-block skipping.
#   A: [N_pad, N_pad] bf16, H: [N_pad, F_pad] bf16, b: [1, F_pad] f32
#   grid = (N_pad//tm, F_pad//tn, N_pad//tk); f32 accumulator in VMEM.
# ----------------------------------------------------------------------------
def _gcn_aggregate_kernel(mask_ref, fetch_ref, a_ref, h_ref, b_ref, o_ref,
                          acc_ref, *, apply_act):
    i = pl.program_id(0)
    k = pl.program_id(2)

    @pl.when(k == 0)
    def _init():
        acc_ref[...] = jnp.zeros_like(acc_ref)

    @pl.when(mask_ref[i, k] != 0)
    def _compute():
        acc_ref[...] += jnp.dot(a_ref[...], h_ref[...],
                                preferred_element_type=jnp.float32)

    @pl.when(k == pl.num_programs(2) - 1)
    def _epilogue():
        out = acc_ref[...] + b_ref[...]          # bias once, in the epilogue
        if apply_act:
            out = jnp.maximum(out, 0.0)          # fused ReLU (VPU)
        o_ref[...] = out.astype(o_ref.dtype)


def gcn_aggregate(a_pad, h_pad, b_pad, block_mask, fetch_idx, *, tm, tk,
                  apply_act=True, out_dtype=jnp.bfloat16):
    """out = act(A_pad @ H_pad + b_pad), block-sparse over A's zero tiles.

    a_pad: [N_pad, N_pad] bf16   (N_pad multiple of 128)
    h_pad: [N_pad, F_pad] bf16   (F_pad multiple of 128)
    b_pad: [F_pad]        f32
    block_mask / fetch_idx: [N_pad//tm, N_pad//tk] int32 (scalar-prefetched)
    """
    n_pad = a_pad.shape[0]
    f_pad = h_pad.shape[1]
    tn = _choose_tn(f_pad)
    out_bytes = jnp.dtype(out_dtype).itemsize
    b2d = b_pad.reshape(1, f_pad).astype(jnp.float32)

    footprint = _vmem_footprint(tm, tk, tn, out_bytes)
    vmem_limit = min(max(int(footprint * 1.5) + (4 << 20), 32 << 20), 48 << 20)

    kernel = functools.partial(_gcn_aggregate_kernel, apply_act=apply_act)
    return pl.pallas_call(
        kernel,
        out_shape=jax.ShapeDtypeStruct((n_pad, f_pad), out_dtype),
        grid_spec=pltpu.PrefetchScalarGridSpec(
            num_scalar_prefetch=2,
            grid=(n_pad // tm, f_pad // tn, n_pad // tk),
            in_specs=[
                # A tile: reuse the previous non-zero block index for zero
                # blocks -> consecutive identical indices elide the DMA.
                pl.BlockSpec((tm, tk), lambda i, j, k, m, f: (i, f[i, k])),
                # H tile follows the same fetched k-block.
                pl.BlockSpec((tk, tn), lambda i, j, k, m, f: (f[i, k], j)),
                # bias tile
                pl.BlockSpec((1, tn), lambda i, j, k, m, f: (0, j)),
            ],
            out_specs=pl.BlockSpec((tm, tn), lambda i, j, k, m, f: (i, j)),
            scratch_shapes=[pltpu.VMEM((tm, tn), jnp.float32)],
        ),
        compiler_params=pltpu.CompilerParams(
            dimension_semantics=("parallel", "parallel", "arbitrary"),
            vmem_limit_bytes=vmem_limit),
    )(block_mask, fetch_idx, a_pad, h_pad, b2d)


# ----------------------------------------------------------------------------
# Dense GCN normalization (matches torch_geometric gcn_norm, add_self_loops),
# scattered directly into a pre-padded buffer and cast to bf16 once:
#   A_hat[dst, src] = d(dst)^-1/2 * w * d(src)^-1/2, d(v)=sum of in-weights(+I)
# ----------------------------------------------------------------------------
def gcn_norm_dense_padded(edge_index, edge_weight, num_nodes, n_pad,
                          out_dtype=jnp.bfloat16):
    src = edge_index[0]
    dst = edge_index[1]
    loop = jnp.arange(num_nodes, dtype=edge_index.dtype)
    row = jnp.concatenate([src, loop])
    col = jnp.concatenate([dst, loop])
    ew = jnp.concatenate(
        [edge_weight.astype(jnp.float32), jnp.ones((num_nodes,), jnp.float32)])

    deg = jnp.zeros((num_nodes,), jnp.float32).at[col].add(ew)
    deg_inv_sqrt = jnp.where(deg > 0, jax.lax.rsqrt(deg), 0.0)
    norm = deg_inv_sqrt[row] * ew * deg_inv_sqrt[col]

    # out[dst] += norm * x'[src]  =>  A[dst, src] = norm   (pad rows/cols = 0)
    a = jnp.zeros((n_pad, n_pad), jnp.float32).at[col, row].add(norm)
    return a.astype(out_dtype)


# ----------------------------------------------------------------------------
# Encoder (skip=False, k=2):  x = relu(conv0(x)); x = relu(conv1(x))
#   conv0: in_channels -> 2*out_channels, conv1: 2*out_channels -> out_channels
# ----------------------------------------------------------------------------
def init_encoder_params(key, in_channels, out_channels, k=2,
                        dtype=jnp.float32):
    assert k >= 2
    dims = [in_channels] + [2 * out_channels] * (k - 1) + [out_channels]
    params = []
    for layer in range(k):
        key, wk = jax.random.split(key)
        fan_in, fan_out = dims[layer], dims[layer + 1]
        limit = jnp.sqrt(6.0 / (fan_in + fan_out))       # Glorot-uniform
        w = jax.random.uniform(wk, (fan_in, fan_out), dtype,
                               minval=-limit, maxval=limit)
        b = jnp.zeros((fan_out,), dtype)
        params.append((w, b))
    return params


def encoder_forward(params, x, edge_index, edge_weight, out_channels):
    n, f_in = x.shape
    n_pad = _round_up(n, 128)

    # Normalized adjacency, built once in a pre-padded bf16 buffer and shared
    # across both layers.
    a_pad = gcn_norm_dense_padded(edge_index, edge_weight, n, n_pad)

    # One tiling (tm, tk) for all layers so the block mask is built once.
    f_pads = [_round_up(w.shape[1], 128) for (w, _) in params]
    tn_max = max(_choose_tn(fp) for fp in f_pads)
    tm, tk = _choose_tiles(n_pad, tn_max, out_bytes=4)
    block_mask, fetch_idx = build_block_mask(edge_index, n, n_pad, tm, tk)

    # Node features: zero-pad rows, keep activations in bf16 between layers.
    h = jnp.zeros((n_pad, f_in), jnp.bfloat16).at[:n, :].set(
        x.astype(jnp.bfloat16))

    num_layers = len(params)
    for li, (w, b) in enumerate(params):
        f_out = w.shape[1]
        f_out_pad = _round_up(f_out, 128)
        # Pad W rows to the carried (padded) input width and cols to 128 lanes;
        # pad columns stay exactly zero through bias + ReLU, so carrying the
        # padded width between layers is numerically safe.
        w_pad = jnp.zeros((h.shape[1], f_out_pad), jnp.bfloat16)
        w_pad = w_pad.at[:w.shape[0], :f_out].set(w.astype(jnp.bfloat16))
        b_pad = jnp.zeros((f_out_pad,), jnp.float32).at[:f_out].set(
            b.astype(jnp.float32))

        # Tiny feature transform hoisted out of the Pallas kernel (bf16 MXU).
        xw = jnp.dot(h, w_pad,
                     preferred_element_type=jnp.float32).astype(jnp.bfloat16)

        is_last = li == num_layers - 1
        out_dtype = jnp.float32 if is_last else jnp.bfloat16
        h = gcn_aggregate(a_pad, xw, b_pad, block_mask, fetch_idx,
                          tm=tm, tk=tk, apply_act=True, out_dtype=out_dtype)

    return h[:n, :out_channels]


# Pure-JAX reference mirroring the same bf16 rounding points.
def encoder_forward_ref(params, x, edge_index, edge_weight, out_channels):
    n = x.shape[0]
    a = gcn_norm_dense_padded(edge_index, edge_weight, n, n,
                              out_dtype=jnp.float32)
    a = a.astype(jnp.bfloat16).astype(jnp.float32)
    h = x.astype(jnp.bfloat16).astype(jnp.float32)
    k = len(params)
    for li, (w, b) in enumerate(params):
        w_q = w.astype(jnp.bfloat16).astype(jnp.float32)
        xw = jnp.dot(h, w_q, preferred_element_type=jnp.float32)
        xw = xw.astype(jnp.bfloat16).astype(jnp.float32)
        out = jnp.maximum(
            jnp.dot(a, xw, preferred_element_type=jnp.float32)
            + b[None, :].astype(jnp.float32), 0.0)
        if li != k - 1:
            h = out.astype(jnp.bfloat16).astype(jnp.float32)
        else:
            h = out
    return h[:, :out_channels]


if __name__ == "__main__":
    key = jax.random.PRNGKey(0)
    k_x, k_e, k_w, k_p = jax.random.split(key, 4)

    num_nodes = 16
    in_channels = 8
    out_channels = 16
    num_edges = 40

    x = jax.random.normal(k_x, (num_nodes, in_channels), jnp.float32)
    edge_index = jax.random.randint(k_e, (2, num_edges), 0, num_nodes,
                                    dtype=jnp.int32)
    edge_weight = jax.random.uniform(k_w, (num_edges,), jnp.float32,
                                     minval=0.1, maxval=1.0)

    params = init_encoder_params(k_p, in_channels, out_channels, k=2)

    out = encoder_forward(params, x, edge_index, edge_weight, out_channels)
    out = jax.block_until_ready(out)

    ref = encoder_forward_ref(params, x, edge_index, edge_weight, out_channels)
    assert out.shape == (num_nodes, out_channels)
    assert jnp.allclose(out, ref, atol=1e-2, rtol=1e-2), (
        float(jnp.max(jnp.abs(out - ref))))

    print("KERNEL_OK")
</pallas_src>

<mosaic_0001>
module attributes {stable_mosaic.version = 11 : i64} {
  func.func @_gcn_aggregate_kernel(%arg0: i32, %arg1: i32, %arg2: i32, %arg3: memref<1x1xi32, #tpu.memory_space<smem>>, %arg4: memref<1x1xi32, #tpu.memory_space<smem>>, %arg5: memref<128x128xbf16, #tpu.memory_space<vmem>>, %arg6: memref<128x128xbf16, #tpu.memory_space<vmem>>, %arg7: memref<1x128xf32, #tpu.memory_space<vmem>>, %arg8: memref<128x128xbf16, #tpu.memory_space<vmem>>, %arg9: memref<128x128xf32, #tpu.memory_space<vmem>>) attributes {dimension_semantics = [#tpu.dimension_semantics<parallel>, #tpu.dimension_semantics<parallel>, #tpu.dimension_semantics<arbitrary>], iteration_bounds = array<i64: 1, 1, 1>, scalar_prefetch = 2 : i64, scratch_operands = 1 : i64, tpu.core_type = #tpu.core_type<tc>, window_params = [{transform_indices = @transform_0, window_bounds = array<i64: 128, 128>}, {transform_indices = @transform_1, window_bounds = array<i64: 128, 128>}, {transform_indices = @transform_2, window_bounds = array<i64: 1, 128>}, {transform_indices = @transform_3, window_bounds = array<i64: 128, 128>}]} {
    %c0_i32 = arith.constant 0 : i32
    %0 = arith.cmpi eq, %arg2, %c0_i32 : i32
    %1 = arith.extui %0 : i1 to i32
    %c0_i32_0 = arith.constant 0 : i32
    %2 = arith.cmpi ne, %1, %c0_i32_0 : i32
    scf.if %2 {
      %cst = arith.constant 0.000000e+00 : f32
      %12 = vector.broadcast %cst : f32 to vector<128x128xf32>
      %c0 = arith.constant 0 : index
      %c0_5 = arith.constant 0 : index
      %13 = vector.load %arg9[%c0, %c0_5] : memref<128x128xf32, #tpu.memory_space<vmem>>, vector<128x128xf32>
      tpu.vector_store %arg9[%c0, %c0_5], %12 {strides = array<i32>} : memref<128x128xf32, #tpu.memory_space<vmem>>, vector<128x128xf32>,
    } else {
    }
    %3 = arith.index_cast %arg0 : i32 to index
    %4 = arith.index_cast %arg2 : i32 to index
    %5 = memref.load %arg3[%3, %4] : memref<1x1xi32, #tpu.memory_space<smem>>
    %c0_i32_1 = arith.constant 0 : i32
    %6 = arith.cmpi ne, %5, %c0_i32_1 : i32
    %7 = arith.extui %6 : i1 to i32
    %c0_i32_2 = arith.constant 0 : i32
    %8 = arith.cmpi ne, %7, %c0_i32_2 : i32
    scf.if %8 {
      %c0 = arith.constant 0 : index
      %c0_5 = arith.constant 0 : index
      %12 = vector.load %arg9[%c0, %c0_5] : memref<128x128xf32, #tpu.memory_space<vmem>>, vector<128x128xf32>
      %c0_6 = arith.constant 0 : index
      %c0_7 = arith.constant 0 : index
      %13 = vector.load %arg5[%c0_6, %c0_7] : memref<128x128xbf16, #tpu.memory_space<vmem>>, vector<128x128xbf16>
      %c0_8 = arith.constant 0 : index
      %c0_9 = arith.constant 0 : index
      %14 = vector.load %arg6[%c0_8, %c0_9] : memref<128x128xbf16, #tpu.memory_space<vmem>>, vector<128x128xbf16>
      %cst = arith.constant dense<0.000000e+00> : vector<128x128xf32>
      %15 = tpu.matmul %13, %14, %cst {dimension_numbers = #tpu.dot_dimension_numbers<[1], [0], [0], [1], [0, 0, 1, 1], [], []>} : vector<128x128xbf16>, vector<128x128xbf16>, vector<128x128xf32> -> vector<128x128xf32>
      %16 = arith.addf %12, %15 : vector<128x128xf32>
      %c0_10 = arith.constant 0 : index
      %c0_11 = arith.constant 0 : index
      %17 = vector.load %arg9[%c0_10, %c0_11] : memref<128x128xf32, #tpu.memory_space<vmem>>, vector<128x128xf32>
      tpu.vector_store %arg9[%c0_10, %c0_11], %16 {strides = array<i32>} : memref<128x128xf32, #tpu.memory_space<vmem>>, vector<128x128xf32>,
    } else {
    }
    %c0_i32_3 = arith.constant 0 : i32
    %9 = arith.cmpi eq, %arg2, %c0_i32_3 : i32
    %10 = arith.extui %9 : i1 to i32
    %c0_i32_4 = arith.constant 0 : i32
    %11 = arith.cmpi ne, %10, %c0_i32_4 : i32
    scf.if %11 {
      %c0 = arith.constant 0 : index
      %c0_5 = arith.constant 0 : index
      %12 = vector.load %arg9[%c0, %c0_5] : memref<128x128xf32, #tpu.memory_space<vmem>>, vector<128x128xf32>
      %c0_6 = arith.constant 0 : index
      %c0_7 = arith.constant 0 : index
      %13 = vector.load %arg7[%c0_6, %c0_7] : memref<1x128xf32, #tpu.memory_space<vmem>>, vector<1x128xf32>
      %14 = vector.broadcast %13 : vector<1x128xf32> to vector<128x128xf32>
      %15 = arith.addf %12, %14 : vector<128x128xf32>
      %cst = arith.constant 0.000000e+00 : f32
      %16 = vector.broadcast %cst : f32 to vector<128x128xf32>
      %17 = arith.maximumf %15, %16 : vector<128x128xf32>
      %18 = arith.truncf %17 : vector<128x128xf32> to vector<128x128xbf16>
      %c0_8 = arith.constant 0 : index
      %c0_9 = arith.constant 0 : index
      %19 = vector.load %arg8[%c0_8, %c0_9] : memref<128x128xbf16, #tpu.memory_space<vmem>>, vector<128x128xbf16>
      tpu.vector_store %arg8[%c0_8, %c0_9], %18 {strides = array<i32>} : memref<128x128xbf16, #tpu.memory_space<vmem>>, vector<128x128xbf16>,
    } else {
    }
    return
  }
  func.func @transform_0(%arg0: i32, %arg1: i32, %arg2: i32, %arg3: memref<1x1xi32, #tpu.memory_space<smem>>, %arg4: memref<1x1xi32, #tpu.memory_space<smem>>) -> (i32, i32) {
    %0 = arith.index_cast %arg0 : i32 to index
    %1 = arith.index_cast %arg2 : i32 to index
    %2 = memref.load %arg4[%0, %1] : memref<1x1xi32, #tpu.memory_space<smem>>
    %c0_i32 = arith.constant 0 : i32
    return %arg0, %2 : i32, i32
  }
  func.func @transform_1(%arg0: i32, %arg1: i32, %arg2: i32, %arg3: memref<1x1xi32, #tpu.memory_space<smem>>, %arg4: memref<1x1xi32, #tpu.memory_space<smem>>) -> (i32, i32) {
    %0 = arith.index_cast %arg0 : i32 to index
    %1 = arith.index_cast %arg2 : i32 to index
    %2 = memref.load %arg4[%0, %1] : memref<1x1xi32, #tpu.memory_space<smem>>
    %c0_i32 = arith.constant 0 : i32
    return %2, %arg1 : i32, i32
  }
  func.func @transform_2(%arg0: i32, %arg1: i32, %arg2: i32, %arg3: memref<1x1xi32, #tpu.memory_space<smem>>, %arg4: memref<1x1xi32, #tpu.memory_space<smem>>) -> (i32, i32) {
    %c0_i32 = arith.constant 0 : i32
    %c0_i32_0 = arith.constant 0 : i32
    return %c0_i32, %arg1 : i32, i32
  }
  func.func @transform_3(%arg0: i32, %arg1: i32, %arg2: i32, %arg3: memref<1x1xi32, #tpu.memory_space<smem>>, %arg4: memref<1x1xi32, #tpu.memory_space<smem>>) -> (i32, i32) {
    %c0_i32 = arith.constant 0 : i32
    return %arg0, %arg1 : i32, i32
  }
}

</mosaic_0001>

<bundles_post_ra>
// kernel: tpu_custom_call.1
= control target key start
LH: loop header
LB: loop body
LE: loop exit
PB: predicated region body
PF: predicated region fallthrough
CT: control target
= control target key end

     0   :  { %12 = vsyncpa [#allocation7], 0  ;;  %s866_s0 = inlined_call_operand.<no memory space> [shape: s32[1,1], index: 0, kind: input, shape index: {}]   ;;  %s867_s1 = inlined_call_operand.<no memory space> [shape: s32[1,1], index: 1, kind: input, shape index: {}]   ;;  %s868_s2 = inlined_call_operand.hbm [shape: bf16[128,128], index: 2, kind: input, shape index: {}]   ;;  %s869_s3 = inlined_call_operand.hbm [shape: bf16[128,128], index: 3, kind: input, shape index: {}]   ;;  %s870_s4 = inlined_call_operand.vmem [shape: f32[1,128], index: 4, kind: input, shape index: {}]   ;;  %s871_s5 = inlined_call_operand.hbm [shape: bf16[128,128], index: 5, kind: output, shape index: {}]  }
   0x1   :  { %13 = vsyncpa [#allocation10], 0 }
   0x2   :  { %14 = vsyncpa [#allocation8], 0  ;;  %s531_s20 = sshll.u32 %s867_s1, 6  ;;  %s788_s24 = smov [#allocation6]  }
   0x3   :  { %s25_s23 = scalar_lea.hbm %s868_s2, %s531_s20  ;;  %s26_s25 = sshll.u32 %s788_s24, 4  ;;  %s27_s25 = int_to_ptr.vmem [resolvable:$true] %s26_s25 }
   0x4   :  { %s568_s28 = sshll.u32 %s867_s1, 10  ;;  %s718_s29 = scalar_lea.hbm %s25_s23, 1024 }
   0x5   :  { %p719_p0 = scmp.ne.s32.totalorder %s25_s23, %s718_s29  ;;  %s720_s7 = scalar_lea.hbm %s868_s2, 1024 }
   0x6   :  { %p721_p1 = scmp.lt.s32.totalorder %s25_s23, %s868_s2  ;;  %p722_p2 = scmp.lt.s32.totalorder %s720_s7, %s718_s29 }
   0x8   :  { %p723_p3 = por %p722_p2, %p721_p1 }
   0xa   :  { %p724_p4 = pnand %p723_p3, %p719_p0 }
   0xc   :  { %727 = shalt.err (!%p724_p4)
}
   0xd   :  { %s728_s10 = scalar_lea.vmem %s27_s25, 1024  ;;  %p733_p6 = scmp.lt.s32.totalorder %s27_s25, %s27_s25 }
   0xe   :  { %p729_p5 = scmp.ne.s32.totalorder %s27_s25, %s728_s10  ;;  %p734_p7 = scmp.lt.s32.totalorder %s728_s10, %s728_s10 }
  0x10   :  { %p735_p8 = por %p734_p7, %p733_p6 }
  0x12   :  { %p736_p9 = pnand %p735_p8, %p729_p5 }
  0x14   :  { %739 = shalt.err (!%p736_p9)
}
  0x15   :  { %s789_s1 = smov 64   ;;  %s790_s11 = smov 4  }
  0x16   :  { %32 = dma.hbm_to_vmem [thread:$0]  %s25_s23, 1024, %s27_s25, [#allocation7], %s789_s1, %s789_s1, %s790_s11  }
  0x17   :  { %s44_s2 = scalar_lea.hbm %s869_s3, %s568_s28  ;;  %s791_s14 = smov [#allocation9]  }
  0x18   :  { %s45_s15 = sshll.u32 %s791_s14, 4  ;;  %s740_s16 = scalar_lea.hbm %s44_s2, 1024  ;;  %s46_s15 = int_to_ptr.vmem [resolvable:$true] %s45_s15 }
  0x19   :  { %p741_p10 = scmp.ne.s32.totalorder %s44_s2, %s740_s16  ;;  %s742_s19 = scalar_lea.hbm %s869_s3, 1024 }
  0x1a   :  { %p743_p11 = scmp.lt.s32.totalorder %s44_s2, %s869_s3  ;;  %p744_p12 = scmp.lt.s32.totalorder %s742_s19, %s740_s16 }
  0x1c   :  { %p745_p13 = por %p744_p12, %p743_p11 }
  0x1e   :  { %p746_p0 = pnand %p745_p13, %p741_p10 }
  0x20   :  { %749 = shalt.err (!%p746_p0)
}
  0x21   :  { %s750_s22 = scalar_lea.vmem %s46_s15, 1024  ;;  %p755_p2 = scmp.lt.s32.totalorder %s46_s15, %s46_s15 }
  0x22   :  { %p751_p1 = scmp.ne.s32.totalorder %s46_s15, %s750_s22  ;;  %p756_p3 = scmp.lt.s32.totalorder %s750_s22, %s750_s22 }
  0x24   :  { %p757_p4 = por %p756_p3, %p755_p2 }
  0x26   :  { %p758_p5 = pnand %p757_p4, %p751_p1 }
  0x28   :  { %761 = shalt.err (!%p758_p5)
}
  0x29   :  { %51 = dma.hbm_to_vmem [thread:$0]  %s44_s2, 1024, %s46_s15, [#allocation10], %s789_s1, %s789_s1, %s790_s11  }
  0x2a   :  { %782 = dma.done.wait [#allocation7], 1024  }
  0x2b   :  { %783 = vsyncadd [#allocation7], 4294966272 }
  0x2c   :  { %784 = dma.done.wait [#allocation10], 1024  }
  0x2d   :  { %785 = vsyncadd [#allocation10], 4294966272  ;;  %v792_v0 = vmov 0.0   ;;  %p534_p6 = scmp.eq.s32.totalorder %s866_s0, 0 }
  0x2e   :  { %74 = vst [vmem:[#allocation2 + $0x30] sm:$0xff] %v792_v0  ;;  %75 = vst [vmem:[#allocation2] sm:$0xff] %v792_v0 }
  0x2f   :  { %76 = vst [vmem:[#allocation2 + $0x58] sm:$0xff] %v792_v0  ;;  %77 = vst [vmem:[#allocation2 + $0x18] sm:$0xff] %v792_v0 }
  0x30   :  { %78 = vst [vmem:[#allocation2 + $0x50] sm:$0xff] %v792_v0  ;;  %79 = vst [vmem:[#allocation2 + $0x68] sm:$0xff] %v792_v0 }
  0x31   :  { %80 = vst [vmem:[#allocation2 + $0x8] sm:$0xff] %v792_v0  ;;  %81 = vst [vmem:[#allocation2 + $0x48] sm:$0xff] %v792_v0  ;;  %97 = sbr.rel (%p534_p6) target bundleno = 297 (0x129), region = 29 }
  0x32   :  { %82 = vst [vmem:[#allocation2 + $0x40] sm:$0xff] %v792_v0  ;;  %83 = vst [vmem:[#allocation2 + $0x20] sm:$0xff] %v792_v0 }
  0x33   :  { %84 = vst [vmem:[#allocation2 + $0x10] sm:$0xff] %v792_v0  ;;  %85 = vst [vmem:[#allocation2 + $0x38] sm:$0xff] %v792_v0 }
  0x34   :  { %86 = vst [vmem:[#allocation2 + $0x60] sm:$0xff] %v792_v0  ;;  %87 = vst [vmem:[#allocation2 + $0x70] sm:$0xff] %v792_v0 }
  0x35   :  { %88 = vst [vmem:[#allocation2 + $0x78] sm:$0xff] %v792_v0  ;;  %89 = vst [vmem:[#allocation2 + $0x28] sm:$0xff] %v792_v0 }
  0x36   :  { %v702_v1 = vld [vmem:[#allocation9 + $0x38] sm:$0xff]   ;;  %v703_v2 = vld [vmem:[#allocation9 + $0x30] sm:$0xff]   ;;  %v704_v3 = vld [vmem:[#allocation9 + $0x28] sm:$0xff]  }
  0x37   :  { %648 = vmatprep.subr.bf16.mxu0 %v702_v1  ;;  %680 = vmatprep.subr.bf16.mxu1 %v702_v1  ;;  %v705_v4 = vld [vmem:[#allocation9 + $0x20] sm:$0xff]   ;;  %v706_v7 = vld [vmem:[#allocation9 + $0x18] sm:$0xff]   ;;  %v707_v8 = vld [vmem:[#allocation9 + $0x10] sm:$0xff]  }
  0x38   :  { %649 = vmatpush3.bf16.msra.mxu0 %v702_v1  ;;  %688 = vmatpush3.bf16.msra.mxu1 %v702_v1  ;;  %v710_v5 = vld [vmem:[#allocation6] sm:$0xff]   ;;  %v708_v9 = vld [vmem:[#allocation9 + $0x8] sm:$0xff]   ;;  %v714_v13 = vld [vmem:[#allocation6 + $0x10] sm:$0xff]  }
  0x39   :  { %650 = vmatprep.subr.bf16.mxu0 %v703_v2  ;;  %681 = vmatprep.subr.bf16.mxu1 %v703_v2  ;;  %v711_v6 = vld [vmem:[#allocation6 + $0x20] sm:$0xff]   ;;  %v712_v11 = vld [vmem:[#allocation6 + $0x8] sm:$0xff]   ;;  %v715_v14 = vld [vmem:[#allocation6 + $0x30] sm:$0xff]  }
  0x3a   :  { %664 = vmatprep.mubr.bf16.mxu0 %v710_v5  ;;  %672 = vmatprep.mubr.bf16.mxu1 %v711_v6  ;;  %v709_v10 = vld [vmem:[#allocation9] sm:$0xff]   ;;  %v713_v12 = vld [vmem:[#allocation6 + $0x28] sm:$0xff]   ;;  %v716_v15 = vld [vmem:[#allocation6 + $0x18] sm:$0xff]  }
  0x3b   :  { %v717_v16 = vld [vmem:[#allocation6 + $0x38] sm:$0xff]   ;;  %v108_v18 = vld [vmem:[#allocation2 + $0x10] sm:$0xff]  ;;  %v106_v22 = vld [vmem:[#allocation2 + $0x40] sm:$0xff] }
  0x3c   :  { %651 = vmatpush3.bf16.msra.mxu0 %v703_v2  ;;  %689 = vmatpush3.bf16.msra.mxu1 %v703_v2  ;;  %v100_v17 = vld [vmem:[#allocation2 + $0x58] sm:$0xff]  ;;  %v98_v21 = vld [vmem:[#allocation2 + $0x30] sm:$0xff]  ;;  %v99_v33 = vld [vmem:[#allocation2] sm:$0xff] }
  0x3d   :  { %652 = vmatprep.subr.bf16.mxu0 %v704_v3  ;;  %682 = vmatprep.subr.bf16.mxu1 %v704_v3  ;;  %v101_v27 = vld [vmem:[#allocation2 + $0x18] sm:$0xff]  ;;  %v107_v34 = vld [vmem:[#allocation2 + $0x20] sm:$0xff]  ;;  %v104_v39 = vld [vmem:[#allocation2 + $0x8] sm:$0xff] }
  0x3e   :  { %v109_v28 = vld [vmem:[#allocation2 + $0x38] sm:$0xff]  ;;  %v102_v45 = vld [vmem:[#allocation2 + $0x50] sm:$0xff]  ;;  %v110_v46 = vld [vmem:[#allocation2 + $0x60] sm:$0xff] }
  0x3f   :  { %v112_v40 = vld [vmem:[#allocation2 + $0x78] sm:$0xff]  ;;  %v105_v51 = vld [vmem:[#allocation2 + $0x48] sm:$0xff]  ;;  %v111_v58 = vld [vmem:[#allocation2 + $0x70] sm:$0xff] }
  0x40   :  { %653 = vmatpush3.bf16.msra.mxu0 %v704_v3  ;;  %690 = vmatpush3.bf16.msra.mxu1 %v704_v3  ;;  %v113_v52 = vld [vmem:[#allocation2 + $0x28] sm:$0xff] }
  0x41   :  { %654 = vmatprep.subr.bf16.mxu0 %v705_v4  ;;  %683 = vmatprep.subr.bf16.mxu1 %v705_v4  ;;  %v103_v57 = vld [vmem:[#allocation2 + $0x68] sm:$0xff] }
  0x44   :  { %655 = vmatpush3.bf16.msra.mxu0 %v705_v4  ;;  %691 = vmatpush3.bf16.msra.mxu1 %v705_v4 }
  0x45   :  { %656 = vmatprep.subr.bf16.mxu0 %v706_v7  ;;  %684 = vmatprep.subr.bf16.mxu1 %v706_v7 }
  0x48   :  { %657 = vmatpush3.bf16.msra.mxu0 %v706_v7  ;;  %692 = vmatpush3.bf16.msra.mxu1 %v706_v7 }
  0x49   :  { %658 = vmatprep.subr.bf16.mxu0 %v707_v8  ;;  %685 = vmatprep.subr.bf16.mxu1 %v707_v8 }
  0x4c   :  { %659 = vmatpush3.bf16.msra.mxu0 %v707_v8  ;;  %693 = vmatpush3.bf16.msra.mxu1 %v707_v8 }
  0x4d   :  { %660 = vmatprep.subr.bf16.mxu0 %v708_v9  ;;  %686 = vmatprep.subr.bf16.mxu1 %v708_v9 }
  0x50   :  { %661 = vmatpush3.bf16.msra.mxu0 %v708_v9  ;;  %694 = vmatpush3.bf16.msra.mxu1 %v708_v9 }
  0x51   :  { %662 = vmatprep.subr.bf16.mxu0 %v709_v10  ;;  %687 = vmatprep.subr.bf16.mxu1 %v709_v10 }
  0x54   :  { %663 = vmatpush3.bf16.msra.mxu0 %v709_v10  ;;  %695 = vmatpush3.bf16.msra.mxu1 %v709_v10 }
  0x57   :  { %665 = vmatmul.mubr.bf16.vlgmr.msra.gmra.mxu0 %v712_v11  ;;  %673 = vmatmul.mubr.bf16.vlgmr.msra.gmra.mxu1 %v713_v12 }
  0x58   :  { %668 = vmatprep.mubr.bf16.mxu0 %v714_v13  ;;  %676 = vmatprep.mubr.bf16.mxu1 %v715_v14 }
  0x5f   :  { %669 = vmatmul.mubr.bf16.gmra.mxu0 %v716_v15  ;;  %677 = vmatmul.mubr.bf16.gmra.mxu1 %v717_v16 }
 0x117   :  { %v666_v19 = vpop.f32.mrf.mxu0  ;;  %v674_v20 = vpop.f32.mrf.mxu1 }
 0x118   :  { %v341_v23 = vadd.f32 %v666_v19, %v100_v17  ;;  %v349_v24 = vadd.f32 %v674_v20, %v108_v18 }
 0x119   :  { %v276_v25 = vpop.f32.mrf.mxu0  ;;  %v308_v26 = vpop.f32.mrf.mxu1 }
 0x11a   :  { %357 = vst [vmem:[#allocation2 + $0x58] sm:$0xff] %v341_v23  ;;  %365 = vst [vmem:[#allocation2 + $0x10] sm:$0xff] %v349_v24  ;;  %v339_v29 = vadd.f32 %v276_v25, %v98_v21  ;;  %v347_v30 = vadd.f32 %v308_v26, %v106_v22 }
 0x11b   :  { %v667_v31 = vpop.f32.mrf.mxu0  ;;  %v675_v32 = vpop.f32.mrf.mxu1 }
 0x11c   :  { %355 = vst [vmem:[#allocation2 + $0x30] sm:$0xff] %v339_v29  ;;  %363 = vst [vmem:[#allocation2 + $0x40] sm:$0xff] %v347_v30  ;;  %v342_v35 = vadd.f32 %v667_v31, %v101_v27  ;;  %v350_v36 = vadd.f32 %v675_v32, %v109_v28 }
 0x11d   :  { %v279_v37 = vpop.f32.mrf.mxu0  ;;  %v311_v38 = vpop.f32.mrf.mxu1 }
 0x11e   :  { %358 = vst [vmem:[#allocation2 + $0x18] sm:$0xff] %v342_v35  ;;  %366 = vst [vmem:[#allocation2 + $0x38] sm:$0xff] %v350_v36  ;;  %v340_v41 = vadd.f32 %v279_v37, %v99_v33  ;;  %v348_v42 = vadd.f32 %v311_v38, %v107_v34 }
 0x11f   :  { %v670_v43 = vpop.f32.mrf.mxu0  ;;  %v678_v44 = vpop.f32.mrf.mxu1 }
 0x120   :  { %356 = vst [vmem:[#allocation2] sm:$0xff] %v340_v41  ;;  %364 = vst [vmem:[#allocation2 + $0x20] sm:$0xff] %v348_v42  ;;  %v345_v47 = vadd.f32 %v670_v43, %v104_v39  ;;  %v353_v48 = vadd.f32 %v678_v44, %v112_v40 }
 0x121   :  { %v292_v49 = vpop.f32.mrf.mxu0  ;;  %v324_v50 = vpop.f32.mrf.mxu1 }
 0x122   :  { %361 = vst [vmem:[#allocation2 + $0x8] sm:$0xff] %v345_v47  ;;  %369 = vst [vmem:[#allocation2 + $0x78] sm:$0xff] %v353_v48  ;;  %v343_v53 = vadd.f32 %v292_v49, %v102_v45  ;;  %v351_v54 = vadd.f32 %v324_v50, %v110_v46 }
 0x123   :  { %v671_v55 = vpop.f32.mrf.mxu0  ;;  %v679_v56 = vpop.f32.mrf.mxu1 }
 0x124   :  { %359 = vst [vmem:[#allocation2 + $0x50] sm:$0xff] %v343_v53  ;;  %367 = vst [vmem:[#allocation2 + $0x60] sm:$0xff] %v351_v54  ;;  %v346_v59 = vadd.f32 %v671_v55, %v105_v51  ;;  %v354_v60 = vadd.f32 %v679_v56, %v113_v52 }
 0x125   :  { %v295_v61 = vpop.f32.mrf.mxu0  ;;  %v327_v62 = vpop.f32.mrf.mxu1 }
 0x126   :  { %362 = vst [vmem:[#allocation2 + $0x48] sm:$0xff] %v346_v59  ;;  %370 = vst [vmem:[#allocation2 + $0x28] sm:$0xff] %v354_v60  ;;  %v344_v63 = vadd.f32 %v295_v61, %v103_v57  ;;  %v352_v0 = vadd.f32 %v327_v62, %v111_v58 }
 0x128   :  { %360 = vst [vmem:[#allocation2 + $0x68] sm:$0xff] %v344_v63  ;;  %368 = vst [vmem:[#allocation2 + $0x70] sm:$0xff] %v352_v0 }
 0x129 PF:  { %v374_v1 = vld [vmem:[#allocation2 + $0x30] sm:$0xff]  ;;  %v375_v2 = vld [vmem:[#allocation2] sm:$0xff]  ;;  %v376_v6 = vld [vmem:[#allocation2 + $0x58] sm:$0xff] }
 0x12a   :  { %v551_v3 = vld [vmem:[%s870_s4] ss:$0 sm:$0xff]  ;;  %v377_v7 = vld [vmem:[#allocation2 + $0x18] sm:$0xff]  ;;  %s793_s4 = smov [#allocation11]  }
 0x12b   :  { %v397_v4 = vadd.f32 %v551_v3, %v374_v1  ;;  %v398_v5 = vadd.f32 %v551_v3, %v375_v2  ;;  %v378_v8 = vld [vmem:[#allocation2 + $0x50] sm:$0xff]  ;;  %v399_v9 = vadd.f32 %v551_v3, %v376_v6  ;;  %v400_v10 = vadd.f32 %v551_v3, %v377_v7  ;;  %v380_v13 = vld [vmem:[#allocation2 + $0x8] sm:$0xff]  ;;  %s514_s25 = sshll.u32 %s793_s4, 4  ;;  %s515_s25 = int_to_ptr.vmem [resolvable:$true] %s514_s25 }
 0x12c   :  { %v401_v12 = vadd.f32 %v551_v3, %v378_v8  ;;  %v403_v18 = vadd.f32 %v551_v3, %v380_v13  ;;  %v382_v19 = vld [vmem:[#allocation2 + $0x40] sm:$0xff]  ;;  %s762_s26 = scalar_lea.vmem %s515_s25, 1024  ;;  %p767_p8 = scmp.lt.s32.totalorder %s515_s25, %s515_s25 }
 0x12d   :  { %v381_v14 = vld [vmem:[#allocation2 + $0x48] sm:$0xff]  ;;  %v413_v15 = vmax.f32 %v397_v4, 0.0  ;;  %v414_v16 = vmax.f32 %v398_v5, 0.0  ;;  %v383_v20 = vld [vmem:[#allocation2 + $0x20] sm:$0xff]  ;;  %v384_v21 = vld [vmem:[#allocation2 + $0x10] sm:$0xff]  ;;  %v415_v22 = vmax.f32 %v399_v9, 0.0  ;;  %v405_v31 = vadd.f32 %v551_v3, %v382_v19  ;;  %p763_p7 = scmp.ne.s32.totalorder %s515_s25, %s762_s26  ;;  %p768_p9 = scmp.lt.s32.totalorder %s762_s26, %s762_s26 }
 0x12e   :  { %v416_v23 = vmax.f32 %v400_v10, 0.0  ;;  %v417_v24 = vmax.f32 %v401_v12, 0.0  ;;  %v404_v25 = vadd.f32 %v551_v3, %v381_v14  ;;  %v385_v26 = vld [vmem:[#allocation2 + $0x38] sm:$0xff]  ;;  %v386_v27 = vld [vmem:[#allocation2 + $0x60] sm:$0xff]  ;;  %v419_v30 = vmax.f32 %v403_v18, 0.0 }
 0x12f   :  { %v379_v11 = vld [vmem:[#allocation2 + $0x68] sm:$0xff]  ;;  %v588_v28 = vpack.c.bf16 %v414_v16, %v413_v15  ;;  %v387_v32 = vld [vmem:[#allocation2 + $0x70] sm:$0xff]  ;;  %v406_v35 = vadd.f32 %v551_v3, %v383_v20  ;;  %v407_v36 = vadd.f32 %v551_v3, %v384_v21  ;;  %v388_v37 = vld [vmem:[#allocation2 + $0x78] sm:$0xff]  ;;  %v421_v40 = vmax.f32 %v405_v31, 0.0  ;;  %p769_p10 = por %p768_p9, %p767_p8 }
 0x130   :  { %v402_v17 = vadd.f32 %v551_v3, %v379_v11  ;;  %v593_v33 = vpack.c.bf16 %v416_v23, %v415_v22  ;;  %v420_v34 = vmax.f32 %v404_v25, 0.0  ;;  %v389_v38 = vld [vmem:[#allocation2 + $0x28] sm:$0xff]  ;;  %v408_v41 = vadd.f32 %v551_v3, %v385_v26 }
 0x131   :  { %589 = vst [vmem:[#allocation11] sm:$0xff] %v588_v28   ;;  %v409_v42 = vadd.f32 %v551_v3, %v386_v27  ;;  %v422_v44 = vmax.f32 %v406_v35, 0.0  ;;  %v423_v45 = vmax.f32 %v407_v36, 0.0  ;;  %v410_v46 = vadd.f32 %v551_v3, %v387_v32  ;;  %p770_p11 = pnand %p769_p10, %p763_p7 }
 0x132   :  { %v418_v29 = vmax.f32 %v402_v17, 0.0  ;;  %625 = vst [vmem:[#allocation11 + $0x8] sm:$0xff] %v593_v33   ;;  %v603_v43 = vpack.c.bf16 %v420_v34, %v419_v30  ;;  %v424_v47 = vmax.f32 %v408_v41, 0.0  ;;  %v411_v49 = vadd.f32 %v551_v3, %v388_v37 }
 0x133   :  { %v425_v48 = vmax.f32 %v409_v42, 0.0  ;;  %v412_v50 = vadd.f32 %v551_v3, %v389_v38  ;;  %v608_v51 = vpack.c.bf16 %v422_v44, %v421_v40  ;;  %v426_v52 = vmax.f32 %v410_v46, 0.0 }
 0x134   :  { %v598_v39 = vpack.c.bf16 %v418_v29, %v417_v24  ;;  %627 = vst [vmem:[#allocation11 + $0x18] sm:$0xff] %v603_v43   ;;  %v613_v53 = vpack.c.bf16 %v424_v47, %v423_v45  ;;  %v427_v54 = vmax.f32 %v411_v49, 0.0 }
 0x135   :  { %v428_v55 = vmax.f32 %v412_v50, 0.0  ;;  %628 = vst [vmem:[#allocation11 + $0x20] sm:$0xff] %v608_v51   ;;  %v618_v56 = vpack.c.bf16 %v426_v52, %v425_v48 }
 0x136   :  { %626 = vst [vmem:[#allocation11 + $0x10] sm:$0xff] %v598_v39   ;;  %629 = vst [vmem:[#allocation11 + $0x28] sm:$0xff] %v613_v53  }
 0x137   :  { %v623_v57 = vpack.c.bf16 %v428_v55, %v427_v54  ;;  %630 = vst [vmem:[#allocation11 + $0x30] sm:$0xff] %v618_v56  }
 0x139   :  { %631 = vst [vmem:[#allocation11 + $0x38] sm:$0xff] %v623_v57  }
 0x13a   :  { %773 = shalt.err (!%p770_p11)
}
 0x13b   :  { %520 = dma.vmem_to_hbm [thread:$0]  %s515_s25, 1024, %s871_s5, [#allocation8], %s789_s1, %s789_s1, %s790_s11  }
 0x13c   :  { %786 = dma.done.wait [#allocation8], 1024  }
 0x13d   :  { %787 = vsyncadd [#allocation8], 4294966272 }
 0x13e   :  { %524 = vsyncpa [#allocation7], 1 }
 0x13f   :  { %525 = vsyncpa [#allocation10], 1 }
 0x140   :  { %526 = vsyncpa [#allocation8], 1 }

</bundles_post_ra>
